<compile_context>
chip_gen: v7x
topology: tpu7x:2x2x1
jax: 0.10.0
libtpu: 0.0.40
codegen_flags: <defaults>
</compile_context>

<pallas_src>
import math
import functools

import numpy as np
import jax
import jax.numpy as jnp
from jax import lax
from jax.experimental import pallas as pl
from jax.experimental.pallas import tpu as pltpu


NEG_INF = -1e30  # keep in f32; moving this to bf16 would overflow to -inf -> NaNs


# ----------------------------- shared math helpers ----------------------------

def _layernorm(x, gamma, beta, eps=1e-5):
    mu = jnp.mean(x, axis=-1, keepdims=True)
    var = jnp.mean(jnp.square(x - mu), axis=-1, keepdims=True)
    return (x - mu) * lax.rsqrt(var + eps) * gamma + beta


def positional_encoding(T, d_model):
    pos = np.arange(T, dtype=np.float32)[:, None]
    div = np.exp(np.arange(0, d_model, 2, dtype=np.float32) *
                 -(math.log(10000.0) / d_model))
    pe = np.zeros((T, d_model), dtype=np.float32)
    pe[:, 0::2] = np.sin(pos * div)
    pe[:, 1::2] = np.cos(pos * div)
    return jnp.asarray(pe)


# ----------------------------- Pallas kernels --------------------------------

def input_proj_kernel(x_ref, pe_ref, w_ref, b_ref, g_ref, beta_ref, o_ref):
    """LN(linear_in(x)) + positional encoding, one batch element per grid step."""
    x = x_ref[0].astype(jnp.bfloat16)                                # (T, d_input)
    h = jnp.dot(x, w_ref[...], preferred_element_type=jnp.float32) + b_ref[...]
    h = _layernorm(h, g_ref[...], beta_ref[...])
    o_ref[0] = h + pe_ref[...]


_STACK_WEIGHT_NAMES = ("wqkv", "bqkv", "wo", "bo", "g1", "be1",
                       "w1", "b1", "w2", "b2", "g2", "be2")


def encoder_stack_kernel(lens_ref,                        # scalar prefetch, SMEM (B,)
                         x_ref,                           # (1, T, d_model) f32
                         wqkv_ref, bqkv_ref, wo_ref, bo_ref,
                         g1_ref, be1_ref, w1_ref, b1_ref,
                         w2_ref, b2_ref, g2_ref, be2_ref,
                         o_ref,                           # (1, T, d_model) f32
                         h_scratch,                       # VMEM (T, d_model) f32
                         *, n_head, d_k, d_v):
    b = pl.program_id(0)
    l = pl.program_id(1)
    n_layers = pl.num_programs(1)
    T = x_ref.shape[1]
    hdk = n_head * d_k
    hdv = n_head * d_v

    # Layer 0: load the projected input into the VMEM-resident activation buffer.
    @pl.when(l == 0)
    def _():
        h_scratch[...] = x_ref[0]

    # Masks built in-kernel from input_lengths (no (B,T,T) HBM mask traffic).
    length = lens_ref[b]
    row = lax.broadcasted_iota(jnp.int32, (T, 1), 0)
    col = lax.broadcasted_iota(jnp.int32, (1, T), 1)
    npm = (row < length).astype(jnp.float32)                         # (T, 1)
    key_bias = jnp.where(col >= length, NEG_INF, 0.0)                # (1, T), f32 additive

    x = h_scratch[...]                                               # (T, d_model) f32
    x_bf = x.astype(jnp.bfloat16)

    # ---- multi-head self-attention ----
    # Fused QKV projection: one wide MXU matmul instead of three narrow ones.
    qkv = jnp.dot(x_bf, wqkv_ref[0],
                  preferred_element_type=jnp.float32) + bqkv_ref[0]  # (T, 2*hdk + hdv)
    q = jnp.stack([qkv[:, h * d_k:(h + 1) * d_k]
                   for h in range(n_head)], axis=0)                  # (H, T, d_k)
    k = jnp.stack([qkv[:, hdk + h * d_k: hdk + (h + 1) * d_k]
                   for h in range(n_head)], axis=0)                  # (H, T, d_k)
    v = jnp.stack([qkv[:, 2 * hdk + h * d_v: 2 * hdk + (h + 1) * d_v]
                   for h in range(n_head)], axis=0)                  # (H, T, d_v)

    # Heads batched into a single pair of contractions.
    s = jnp.einsum("hqd,hkd->hqk", q.astype(jnp.bfloat16), k.astype(jnp.bfloat16),
                   preferred_element_type=jnp.float32) * (1.0 / math.sqrt(d_k))
    s = s + key_bias                                                 # additive mask (hoisted)
    s = s - jnp.max(s, axis=-1, keepdims=True)
    p = jnp.exp(s)
    p = p * pl.reciprocal(jnp.sum(p, axis=-1, keepdims=True), approx=True)
    ctx = jnp.einsum("hqk,hkd->hqd", p.astype(jnp.bfloat16), v.astype(jnp.bfloat16),
                     preferred_element_type=jnp.float32)             # (H, T, d_v)
    ctx = jnp.concatenate([ctx[h] for h in range(n_head)], axis=-1)  # (T, H*d_v)

    # Single output projection on the concatenated heads.
    attn = jnp.dot(ctx.astype(jnp.bfloat16), wo_ref[0],
                   preferred_element_type=jnp.float32) + bo_ref[0]
    h1 = _layernorm(attn + x, g1_ref[0], be1_ref[0]) * npm

    # ---- position-wise feed-forward ----
    f = jnp.maximum(jnp.dot(h1.astype(jnp.bfloat16), w1_ref[0],
                            preferred_element_type=jnp.float32) + b1_ref[0], 0.0)
    f = jnp.dot(f.astype(jnp.bfloat16), w2_ref[0],
                preferred_element_type=jnp.float32) + b2_ref[0]
    h2 = _layernorm(f + h1, g2_ref[0], be2_ref[0]) * npm

    h_scratch[...] = h2                                              # carry to next layer

    @pl.when(l == n_layers - 1)
    def _():
        o_ref[0] = h2


# ----------------------------- wrappers ---------------------------------------

def run_input_proj(x, pe, p):
    B, T, d_input = x.shape
    d_model = p["w"].shape[1]
    weights = [pe, p["w"], p["b"], p["g"], p["beta"]]
    in_specs = [pl.BlockSpec((1, T, d_input), lambda b: (b, 0, 0))] + \
               [pl.BlockSpec(w.shape, lambda b: (0, 0)) for w in weights]
    return pl.pallas_call(
        input_proj_kernel,
        out_shape=jax.ShapeDtypeStruct((B, T, d_model), jnp.float32),
        grid=(B,),
        in_specs=in_specs,
        out_specs=pl.BlockSpec((1, T, d_model), lambda b: (b, 0, 0)),
        compiler_params=pltpu.CompilerParams(dimension_semantics=("parallel",)),
    )(x, *weights)


def run_encoder_stack(x, input_lengths, stacked, *, n_head, d_k, d_v):
    B, T, d_model = x.shape
    L = stacked["wqkv"].shape[0]
    d_inner = stacked["w1"].shape[2]
    weights = [stacked[n] for n in _STACK_WEIGHT_NAMES]

    def wspec(w):
        # block = one layer's worth; last two dims are the full array dims.
        return pl.BlockSpec((1,) + tuple(w.shape[1:]), lambda b, l, lens: (l, 0, 0))

    in_specs = [pl.BlockSpec((1, T, d_model), lambda b, l, lens: (b, 0, 0))] + \
               [wspec(w) for w in weights]
    out_spec = pl.BlockSpec((1, T, d_model), lambda b, l, lens: (b, 0, 0))

    hdk, hdv = n_head * d_k, n_head * d_v
    flops_layer = (2 * T * d_model * (2 * hdk + hdv)      # fused QKV projection
                   + 2 * n_head * T * T * d_k             # scores
                   + 2 * n_head * T * T * d_v             # ctx
                   + 2 * T * hdv * d_model                # output projection
                   + 4 * T * d_model * d_inner)           # FFN
    weight_bytes = sum(int(w.size) * w.dtype.itemsize for w in weights)
    cost = pl.CostEstimate(
        flops=int(B * L * flops_layer),
        transcendentals=int(B * L * n_head * T * T),
        bytes_accessed=int(B * weight_bytes + 2 * int(x.size) * 4))

    grid_spec = pltpu.PrefetchScalarGridSpec(
        num_scalar_prefetch=1,
        grid=(B, L),
        in_specs=in_specs,
        out_specs=out_spec,
        scratch_shapes=[pltpu.VMEM((T, d_model), jnp.float32)])

    kernel = functools.partial(encoder_stack_kernel, n_head=n_head, d_k=d_k, d_v=d_v)
    return pl.pallas_call(
        kernel,
        out_shape=jax.ShapeDtypeStruct((B, T, d_model), jnp.float32),
        grid_spec=grid_spec,
        compiler_params=pltpu.CompilerParams(
            dimension_semantics=("parallel", "arbitrary")),
        cost_estimate=cost,
    )(input_lengths, x, *weights)


def stack_layer_params(layers):
    """Fuse QKV weights per layer and stack everything with a leading layer dim."""
    stacked = {
        "wqkv": jnp.stack([jnp.concatenate([lp["wq"], lp["wk"], lp["wv"]], axis=1)
                           for lp in layers], axis=0),
        "bqkv": jnp.stack([jnp.concatenate([lp["bq"], lp["bk"], lp["bv"]], axis=1)
                           for lp in layers], axis=0),
    }
    for name in ("wo", "bo", "g1", "be1", "w1", "b1", "w2", "b2", "g2", "be2"):
        stacked[name] = jnp.stack([lp[name] for lp in layers], axis=0)
    return stacked


def encoder_forward(padded_input, input_lengths, params, cfg):
    B, T, _ = padded_input.shape
    d_model = cfg["d_model"]
    pe = positional_encoding(T, d_model)
    x = run_input_proj(padded_input, pe, params["in"])
    stacked = stack_layer_params(params["layers"])
    return run_encoder_stack(x, input_lengths.astype(jnp.int32), stacked,
                             n_head=cfg["n_head"], d_k=cfg["d_k"], d_v=cfg["d_v"])


# ----------------------------- pure-JAX reference -----------------------------

def _mm(a, w_bf16):
    """bf16-input matmul with f32 accumulation (matches the kernel's matmul path)."""
    return jnp.einsum("...ij,jk->...ik", a.astype(jnp.bfloat16), w_bf16,
                      preferred_element_type=jnp.float32)


def _ref_forward(padded_input, input_lengths, params, cfg):
    B, T, _ = padded_input.shape
    d_model, n_head, d_k, d_v = cfg["d_model"], cfg["n_head"], cfg["d_k"], cfg["d_v"]
    valid = (jnp.arange(T)[None, :] < input_lengths[:, None]).astype(jnp.float32)
    npm = valid[..., None]                                    # (B, T, 1)
    key_mask = (1.0 - valid)[:, None, None, :]                # (B, 1, 1, T), 1 == masked

    pe = positional_encoding(T, d_model)
    p = params["in"]
    x = _layernorm(_mm(padded_input, p["w"]) + p["b"], p["g"], p["beta"]) + pe[None]

    for lp in params["layers"]:
        q = (_mm(x, lp["wq"]) + lp["bq"]).reshape(B, T, n_head, d_k).transpose(0, 2, 1, 3)
        k = (_mm(x, lp["wk"]) + lp["bk"]).reshape(B, T, n_head, d_k).transpose(0, 2, 1, 3)
        v = (_mm(x, lp["wv"]) + lp["bv"]).reshape(B, T, n_head, d_v).transpose(0, 2, 1, 3)
        s = jnp.einsum("bhqd,bhkd->bhqk", q.astype(jnp.bfloat16), k.astype(jnp.bfloat16),
                       preferred_element_type=jnp.float32) / math.sqrt(d_k)
        s = jnp.where(key_mask > 0.5, NEG_INF, s)
        a = jax.nn.softmax(s, axis=-1)
        ctx = jnp.einsum("bhqk,bhkd->bhqd", a.astype(jnp.bfloat16), v.astype(jnp.bfloat16),
                         preferred_element_type=jnp.float32)
        ctx = ctx.transpose(0, 2, 1, 3).reshape(B, T, n_head * d_v)
        attn = _mm(ctx, lp["wo"]) + lp["bo"]
        h1 = _layernorm(attn + x, lp["g1"], lp["be1"]) * npm
        f = jnp.maximum(_mm(h1, lp["w1"]) + lp["b1"], 0.0)
        f = _mm(f, lp["w2"]) + lp["b2"]
        x = _layernorm(f + h1, lp["g2"], lp["be2"]) * npm
    return x


# ----------------------------- parameter init ---------------------------------

def init_params(key, cfg):
    d_input, d_model = cfg["d_input"], cfg["d_model"]
    n_head, d_k, d_v, d_inner = cfg["n_head"], cfg["d_k"], cfg["d_v"], cfg["d_inner"]

    def dense(k, fan_in, fan_out):
        scale = 1.0 / math.sqrt(fan_in)
        w = jax.random.uniform(k, (fan_in, fan_out), jnp.float32, -scale, scale)
        return w.astype(jnp.bfloat16)          # matmul weights stored / streamed in bf16

    keys = jax.random.split(key, 1 + cfg["n_layers"])
    params = {"in": {
        "w": dense(keys[0], d_input, d_model),
        "b": jnp.zeros((1, d_model), jnp.float32),
        "g": jnp.ones((1, d_model), jnp.float32),
        "beta": jnp.zeros((1, d_model), jnp.float32),
    }, "layers": []}

    for li in range(cfg["n_layers"]):
        ks = jax.random.split(keys[1 + li], 6)
        params["layers"].append({
            "wq": dense(ks[0], d_model, n_head * d_k),
            "bq": jnp.zeros((1, n_head * d_k), jnp.float32),
            "wk": dense(ks[1], d_model, n_head * d_k),
            "bk": jnp.zeros((1, n_head * d_k), jnp.float32),
            "wv": dense(ks[2], d_model, n_head * d_v),
            "bv": jnp.zeros((1, n_head * d_v), jnp.float32),
            "wo": dense(ks[3], n_head * d_v, d_model),
            "bo": jnp.zeros((1, d_model), jnp.float32),
            "g1": jnp.ones((1, d_model), jnp.float32),
            "be1": jnp.zeros((1, d_model), jnp.float32),
            "w1": dense(ks[4], d_model, d_inner),
            "b1": jnp.zeros((1, d_inner), jnp.float32),
            "w2": dense(ks[5], d_inner, d_model),
            "b2": jnp.zeros((1, d_model), jnp.float32),
            "g2": jnp.ones((1, d_model), jnp.float32),
            "be2": jnp.zeros((1, d_model), jnp.float32),
        })
    return params


# ----------------------------- main --------------------------------------------

if __name__ == "__main__":
    cfg = dict(d_input=16, n_layers=2, n_head=2, d_k=16, d_v=16,
               d_model=32, d_inner=64)
    B, T = 2, 8

    key = jax.random.PRNGKey(0)
    k_x, k_p = jax.random.split(key)
    padded_input = jax.random.normal(k_x, (B, T, cfg["d_input"]), jnp.float32)
    input_lengths = jnp.array([8, 5], dtype=jnp.int32)
    params = init_params(k_p, cfg)

    out = jax.block_until_ready(encoder_forward(padded_input, input_lengths, params, cfg))
    ref = jax.block_until_ready(_ref_forward(padded_input, input_lengths, params, cfg))

    # bf16 matmul operands + EUP approx reciprocal in the kernel softmax => compare at a
    # bf16-level tolerance against a reference that uses the same bf16 matmul inputs.
    np.testing.assert_allclose(np.asarray(out), np.asarray(ref), rtol=5e-2, atol=5e-2)

    print("KERNEL_OK")
</pallas_src>

<mosaic_0001>
module attributes {stable_mosaic.version = 11 : i64} {
  func.func @input_proj_kernel(%arg0: i32, %arg1: memref<1x8x16xf32, #tpu.memory_space<vmem>>, %arg2: memref<8x32xf32, #tpu.memory_space<vmem>>, %arg3: memref<16x32xbf16, #tpu.memory_space<vmem>>, %arg4: memref<1x32xf32, #tpu.memory_space<vmem>>, %arg5: memref<1x32xf32, #tpu.memory_space<vmem>>, %arg6: memref<1x32xf32, #tpu.memory_space<vmem>>, %arg7: memref<1x8x32xf32, #tpu.memory_space<vmem>>) attributes {dimension_semantics = [#tpu.dimension_semantics<parallel>], iteration_bounds = array<i64: 2>, scalar_prefetch = 0 : i64, scratch_operands = 0 : i64, tpu.core_type = #tpu.core_type<tc>, window_params = [{transform_indices = @transform_0, window_bounds = array<i64: 1, 8, 16>}, {pipeline_mode = #tpu.pipeline_mode<synchronous>, transform_indices = @transform_1, window_bounds = array<i64: 8, 32>}, {pipeline_mode = #tpu.pipeline_mode<synchronous>, transform_indices = @transform_2, window_bounds = array<i64: 16, 32>}, {pipeline_mode = #tpu.pipeline_mode<synchronous>, transform_indices = @transform_3, window_bounds = array<i64: 1, 32>}, {pipeline_mode = #tpu.pipeline_mode<synchronous>, transform_indices = @transform_4, window_bounds = array<i64: 1, 32>}, {pipeline_mode = #tpu.pipeline_mode<synchronous>, transform_indices = @transform_5, window_bounds = array<i64: 1, 32>}, {transform_indices = @transform_6, window_bounds = array<i64: 1, 8, 32>}]} {
    %c0 = arith.constant 0 : index
    %c0_0 = arith.constant 0 : index
    %c0_1 = arith.constant 0 : index
    %0 = vector.load %arg1[%c0, %c0_0, %c0_1] : memref<1x8x16xf32, #tpu.memory_space<vmem>>, vector<1x8x16xf32>
    %1 = vector.shape_cast %0 : vector<1x8x16xf32> to vector<8x16xf32>
    %2 = arith.truncf %1 : vector<8x16xf32> to vector<8x16xbf16>
    %c0_2 = arith.constant 0 : index
    %c0_3 = arith.constant 0 : index
    %3 = vector.load %arg3[%c0_2, %c0_3] : memref<16x32xbf16, #tpu.memory_space<vmem>>, vector<16x32xbf16>
    %cst = arith.constant dense<0.000000e+00> : vector<8x32xf32>
    %4 = tpu.matmul %2, %3, %cst {dimension_numbers = #tpu.dot_dimension_numbers<[1], [0], [0], [1], [0, 0, 1, 1], [], []>} : vector<8x16xbf16>, vector<16x32xbf16>, vector<8x32xf32> -> vector<8x32xf32>
    %c0_4 = arith.constant 0 : index
    %c0_5 = arith.constant 0 : index
    %5 = vector.load %arg4[%c0_4, %c0_5] : memref<1x32xf32, #tpu.memory_space<vmem>>, vector<1x32xf32>
    %6 = vector.broadcast %5 : vector<1x32xf32> to vector<8x32xf32>
    %7 = arith.addf %4, %6 : vector<8x32xf32>
    %c0_6 = arith.constant 0 : index
    %c0_7 = arith.constant 0 : index
    %8 = vector.load %arg5[%c0_6, %c0_7] : memref<1x32xf32, #tpu.memory_space<vmem>>, vector<1x32xf32>
    %c0_8 = arith.constant 0 : index
    %c0_9 = arith.constant 0 : index
    %9 = vector.load %arg6[%c0_8, %c0_9] : memref<1x32xf32, #tpu.memory_space<vmem>>, vector<1x32xf32>
    %cst_10 = arith.constant dense<0.000000e+00> : vector<8xf32>
    %10 = vector.multi_reduction <add>, %7, %cst_10 [1] : vector<8x32xf32> to vector<8xf32>
    %11 = vector.shape_cast %10 : vector<8xf32> to vector<8x1xf32>
    %cst_11 = arith.constant 3.200000e+01 : f32
    %12 = vector.broadcast %cst_11 : f32 to vector<8x1xf32>
    %13 = arith.divf %11, %12 : vector<8x1xf32>
    %14 = vector.broadcast %13 : vector<8x1xf32> to vector<8x32xf32>
    %15 = arith.subf %7, %14 : vector<8x32xf32>
    %16 = arith.mulf %15, %15 : vector<8x32xf32>
    %cst_12 = arith.constant dense<0.000000e+00> : vector<8xf32>
    %17 = vector.multi_reduction <add>, %16, %cst_12 [1] : vector<8x32xf32> to vector<8xf32>
    %18 = vector.shape_cast %17 : vector<8xf32> to vector<8x1xf32>
    %cst_13 = arith.constant 3.200000e+01 : f32
    %19 = vector.broadcast %cst_13 : f32 to vector<8x1xf32>
    %20 = arith.divf %18, %19 : vector<8x1xf32>
    %21 = vector.broadcast %13 : vector<8x1xf32> to vector<8x32xf32>
    %22 = arith.subf %7, %21 : vector<8x32xf32>
    %cst_14 = arith.constant 9.99999974E-6 : f32
    %23 = vector.broadcast %cst_14 : f32 to vector<8x1xf32>
    %24 = arith.addf %20, %23 : vector<8x1xf32>
    %25 = math.rsqrt %24 : vector<8x1xf32>
    %26 = vector.broadcast %25 : vector<8x1xf32> to vector<8x32xf32>
    %27 = arith.mulf %22, %26 : vector<8x32xf32>
    %28 = vector.broadcast %8 : vector<1x32xf32> to vector<8x32xf32>
    %29 = arith.mulf %27, %28 : vector<8x32xf32>
    %30 = vector.broadcast %9 : vector<1x32xf32> to vector<8x32xf32>
    %31 = arith.addf %29, %30 : vector<8x32xf32>
    %c0_15 = arith.constant 0 : index
    %c0_16 = arith.constant 0 : index
    %32 = vector.load %arg2[%c0_15, %c0_16] : memref<8x32xf32, #tpu.memory_space<vmem>>, vector<8x32xf32>
    %33 = arith.addf %31, %32 : vector<8x32xf32>
    %c0_17 = arith.constant 0 : index
    %c0_18 = arith.constant 0 : index
    %c0_19 = arith.constant 0 : index
    %34 = vector.load %arg7[%c0_17, %c0_18, %c0_19] : memref<1x8x32xf32, #tpu.memory_space<vmem>>, vector<1x8x32xf32>
    %35 = vector.shape_cast %34 : vector<1x8x32xf32> to vector<8x32xf32>
    %36 = vector.shape_cast %33 : vector<8x32xf32> to vector<1x8x32xf32>
    tpu.vector_store %arg7[%c0_17, %c0_18, %c0_19], %36 {strides = array<i32>} : memref<1x8x32xf32, #tpu.memory_space<vmem>>, vector<1x8x32xf32>,
    return
  }
  func.func @transform_0(%arg0: i32) -> (i32, i32, i32) {
    %c0_i32 = arith.constant 0 : i32
    %c0_i32_0 = arith.constant 0 : i32
    %c0_i32_1 = arith.constant 0 : i32
    return %arg0, %c0_i32, %c0_i32_0 : i32, i32, i32
  }
  func.func @transform_1(%arg0: i32) -> (i32, i32) {
    %c0_i32 = arith.constant 0 : i32
    %c0_i32_0 = arith.constant 0 : i32
    %c0_i32_1 = arith.constant 0 : i32
    return %c0_i32, %c0_i32_0 : i32, i32
  }
  func.func @transform_2(%arg0: i32) -> (i32, i32) {
    %c0_i32 = arith.constant 0 : i32
    %c0_i32_0 = arith.constant 0 : i32
    %c0_i32_1 = arith.constant 0 : i32
    return %c0_i32, %c0_i32_0 : i32, i32
  }
  func.func @transform_3(%arg0: i32) -> (i32, i32) {
    %c0_i32 = arith.constant 0 : i32
    %c0_i32_0 = arith.constant 0 : i32
    %c0_i32_1 = arith.constant 0 : i32
    return %c0_i32, %c0_i32_0 : i32, i32
  }
  func.func @transform_4(%arg0: i32) -> (i32, i32) {
    %c0_i32 = arith.constant 0 : i32
    %c0_i32_0 = arith.constant 0 : i32
    %c0_i32_1 = arith.constant 0 : i32
    return %c0_i32, %c0_i32_0 : i32, i32
  }
  func.func @transform_5(%arg0: i32) -> (i32, i32) {
    %c0_i32 = arith.constant 0 : i32
    %c0_i32_0 = arith.constant 0 : i32
    %c0_i32_1 = arith.constant 0 : i32
    return %c0_i32, %c0_i32_0 : i32, i32
  }
  func.func @transform_6(%arg0: i32) -> (i32, i32, i32) {
    %c0_i32 = arith.constant 0 : i32
    %c0_i32_0 = arith.constant 0 : i32
    %c0_i32_1 = arith.constant 0 : i32
    return %arg0, %c0_i32, %c0_i32_0 : i32, i32, i32
  }
}

</mosaic_0001>

<bundles_post_ra>
// kernel: tpu_custom_call.1
= control target key start
LH: loop header
LB: loop body
LE: loop exit
PB: predicated region body
PF: predicated region fallthrough
CT: control target
= control target key end

     0   :  { %11 = vsyncpa [#allocation3], 0  ;;  %s1035_s0 = inlined_call_operand.hbm [shape: f32[2,8,16], index: 0, kind: input, shape index: {}]   ;;  %s1036_s1 = inlined_call_operand.hbm [shape: f32[8,32], index: 1, kind: input, shape index: {}]   ;;  %s1037_s2 = inlined_call_operand.hbm [shape: bf16[16,32], index: 2, kind: input, shape index: {}]   ;;  %s1038_s3 = inlined_call_operand.vmem [shape: f32[1,32], index: 3, kind: input, shape index: {}]   ;;  %s1039_s4 = inlined_call_operand.vmem [shape: f32[1,32], index: 4, kind: input, shape index: {}]   ;;  %s1040_s5 = inlined_call_operand.vmem [shape: f32[1,32], index: 5, kind: input, shape index: {}]   ;;  %s1041_s6 = inlined_call_operand.hbm [shape: f32[2,8,32], index: 6, kind: output, shape index: {}]  }
   0x1   :  { %13 = vsyncpa [#allocation3 + $0x1], 0 }
   0x2   :  { %14 = vsyncpa [#allocation6], 0 }
   0x3   :  { %15 = vsyncpa [#allocation4], 0 }
   0x4   :  { %17 = vsyncpa [#allocation4 + $0x1], 0  ;;  %s797_s21 = smov 0   ;;  %s799_s22 = smov 0  }
   0x5   :  { %s801_s23 = smov 0   ;;  %s803_s24 = smov 0  }
   0x6 LB: > { %s818_s25 = sadd.s32 4294967295, %s752_s24   ;;  %s493_s26 = sadd.s32 4294967294, %s752_s24   ;;  %s752_s24 = sphi %s803_s24, %s1061_s24   ;;  %s748_s23 = sphi %s801_s23, %s1060_s23   ;;  %s744_s22 = sphi %s799_s22, %s1059_s22   ;;  %s740_s21 = sphi %s797_s21, %s1058_s21  }
   0x7   : > { %p43_p0 = scmp.ne.s32.totalorder %s744_s22, %s740_s21  ;;  %p1042_p1 = scmp.eq.s32.totalorder %s818_s25, 0 }
   0x8   : > { %p178_p3 = scmp.eq.s32.totalorder %s493_s26, 1  ;;  %p494_p5 = scmp.ge.s32.totalorder %s752_s24, 1 }
   0x9   : > { %p827_p4 = por %p1042_p1, %p43_p0  ;;  %p185_p7 = scmp.lt.s32.totalorder %s752_s24, 3 }
   0xa   : > { %p832_p6 = por %p178_p3, %p43_p0  ;;  %s754_s30 = smov [#allocation5]  }
   0xb   : > { %s1045_s27 = scalar_select %p827_p4, 1, 0 }
   0xc   : > { %s1046_s28 = scalar_select %p832_p6, 1, 0 }
   0xd   : > { %p837_p8 = pnand %p494_p5, %p185_p7  ;;  %s198_s7 = sshll.u32 %s754_s30, 4  ;;  %s199_s7 = int_to_ptr.vmem [resolvable:$true] %s198_s7 }
   0xe   : > { %s755_s8 = smov [#allocation7]   ;;  %s596_s13 = scalar_lea.hbm %s1036_s1, 128 }
   0xf   : > { %s1047_s29 = scalar_select %p837_p8, 1, 0 }
  0x10   : > { %p534_p10 = pneg %p837_p8  ;;  %s208_s9 = sshll.u32 %s755_s8, 4  ;;  %s850_s9 = int_to_ptr.vmem [resolvable:$true] %s208_s9 }
  0x11   : > { %p597_p12 = scmp.ne.s32.totalorder %s1036_s1, %s596_s13  ;;  %p603_p5 = scmp.lt.u32.totalorder %s596_s13, %s1036_s1 }
  0x12   : > { %p846_p11 = pnand %p534_p10, %p1042_p1 }
  0x14   : > { %p598_p13 = pneg %p846_p11 }
  0x16   : > { %p599_p0 = pnand %p598_p13, %p597_p12 }
  0x18   : > { %p600_p3 = pneg %p599_p0 }
  0x1a   : > { %p605_p7 = pnand %p603_p5, %p600_p3 }
  0x1c   : > { %608 = shalt.err (!%p605_p7)
}
  0x1d   : > { %s609_s18 = scalar_lea.vmem %s199_s7, 128  ;;  %p617_p2 = scmp.lt.s32.totalorder %s199_s7, %s199_s7 }
  0x1e   : > { %p610_p10 = scmp.ne.s32.totalorder %s199_s7, %s609_s18  ;;  %p618_p6 = scmp.lt.s32.totalorder %s609_s18, %s609_s18 }
  0x20   : > { %p612_p9 = pnand %p610_p10, %p598_p13  ;;  %p619_p4 = por %p618_p6, %p617_p2 }
  0x22   : > { %p613_p1 = pneg %p612_p9 }
  0x24   : > { %p620_p8 = pnand %p619_p4, %p613_p1 }
  0x26   : > { %623 = shalt.err (!%p620_p8)
}
  0x27   : > { %537 = dma.hbm_to_vmem [thread:$0]  (!%p846_p11), %s1036_s1, 128, %s199_s7, [#allocation6]  }
  0x28   : > { %s624_s8 = scalar_lea.hbm %s1037_s2, 128 }
  0x29   : > { %p625_p9 = scmp.ne.s32.totalorder %s1037_s2, %s624_s8  ;;  %p631_p4 = scmp.lt.u32.totalorder %s624_s8, %s1037_s2 }
  0x2b   : > { %p627_p2 = pnand %p625_p9, %p598_p13 }
  0x2d   : > { %p628_p1 = pneg %p627_p2 }
  0x2f   : > { %p633_p6 = pnand %p631_p4, %p628_p1 }
  0x31   : > { %636 = shalt.err (!%p633_p6)
}
  0x32   : > { %s637_s7 = scalar_lea.vmem %s850_s9, 128  ;;  %p645_p3 = scmp.lt.s32.totalorder %s850_s9, %s850_s9 }
  0x33   : > { %p638_p8 = scmp.ne.s32.totalorder %s850_s9, %s637_s7  ;;  %p646_p5 = scmp.lt.s32.totalorder %s637_s7, %s637_s7 }
  0x35   : > { %p640_p12 = pnand %p638_p8, %p598_p13  ;;  %p647_p7 = por %p646_p5, %p645_p3 }
  0x37   : > { %p641_p0 = pneg %p640_p12 }
  0x39   : > { %p648_p10 = pnand %p647_p7, %p641_p0 }
  0x3b   : > { %651 = shalt.err (!%p648_p10)
}
  0x3c   : > { %s756_s15 = smov 64   ;;  %s757_s16 = smov 4  }
  0x3d   : > { %540 = dma.hbm_to_vmem [thread:$0]  (!%p846_p11), %s1037_s2, 128, %s850_s9, [#allocation6], %s756_s15, %s756_s15, %s757_s16  }
  0x3e   : > { %s900_s19 = sadd.s32 1, %s752_s24   ;;  %s30_s20 = sadd.s32 1, %s748_s23 }
  0x3f   : > { %s27_s26 = ssub.s32 %s752_s24, %s900_s19  ;;  %p37_p13 = scmp.ne.s32.totalorder %s748_s23, %s744_s22 }
  0x40   : > { %p28_p9 = scmp.eq.s32.totalorder %s27_s26, 0  ;;  %p38_p2 = scmp.eq.s32.totalorder %s752_s24, 0 }
  0x41   : > { %p1049_p1 = scmp.eq.s32.totalorder %s818_s25, 1  ;;  %p551_p6 = scmp.lt.s32.totalorder %s752_s24, 2 }
  0x42   : > { %s916_s8 = scalar_select %p28_p9, %s748_s23, %s30_s20  }
  0x43   : > { %p910_p4 = por %p1049_p1, %p37_p13  ;;  %p39_p8 = por %p38_p2, %p37_p13 }
  0x44   : > { %s231_s10 = sand.u32 1, %s748_s23   ;;  %s499_s9 = sshll.u32 %s752_s24, 7 }
  0x45   : > { %s498_s11 = sshll.u32 %s231_s10, 3  ;;  %s923_s14 = scalar_lea.hbm %s1035_s0, %s499_s9 }
  0x46   : > { %s235_s7 = scalar_lea.vmem [#allocation2], %s498_s11  ;;  %p927_p11 = pnand %p551_p6, %p39_p8 }
  0x47   : > { %s242_s15 = sshll.u32 %s235_s7, 4  ;;  %s232_s17 = scalar_lea.sflag [#allocation3], %s231_s10  ;;  %s925_s15 = int_to_ptr.vmem [resolvable:$true] %s242_s15 }
  0x48   : > { %s652_s18 = scalar_lea.hbm %s923_s14, 128  ;;  %p654_p0 = pneg %p927_p11 }
  0x49   : > { %p653_p12 = scmp.ne.s32.totalorder %s923_s14, %s652_s18  ;;  %s657_s11 = scalar_lea.hbm %s1035_s0, 256 }
  0x4a   : > { %p658_p7 = scmp.lt.u32.totalorder %s923_s14, %s1035_s0  ;;  %p659_p10 = scmp.lt.u32.totalorder %s657_s11, %s652_s18 }
  0x4b   : > { %p655_p3 = pnand %p654_p0, %p653_p12  ;;  %p661_p9 = scmp.lt.u32.totalorder %s652_s18, %s923_s14 }
  0x4c   : > { %p660_p13 = por %p659_p10, %p658_p7 }
  0x4d   : > { %p656_p5 = pneg %p655_p3 }
  0x4e   : > { %p662_p2 = por %p661_p9, %p660_p13 }
  0x50   : > { %p663_p1 = pnand %p662_p2, %p656_p5 }
  0x52   : > { %666 = shalt.err (!%p663_p1)
}
  0x53   : > { %s667_s10 = scalar_lea.vmem %s925_s15, 128  ;;  %s758_s13 = smov [#allocation2]  }
  0x54   : > { %p668_p6 = scmp.ne.s32.totalorder %s925_s15, %s667_s10  ;;  %s672_s7 = sshll.u32 %s758_s13, 4  ;;  %s673_s7 = int_to_ptr.vmem [resolvable:$false] %s672_s7 }
  0x55   : > { %s674_s20 = scalar_lea.vmem %s673_s7, 256  ;;  %p675_p3 = scmp.lt.s32.totalorder %s925_s15, %s673_s7 }
  0x56   : > { %p670_p8 = pnand %p668_p6, %p654_p0  ;;  %p676_p7 = scmp.lt.s32.totalorder %s674_s20, %s667_s10 }
  0x58   : > { %p671_p12 = pneg %p670_p8  ;;  %p677_p10 = por %p676_p7, %p675_p3 }
  0x5a   : > { %p678_p13 = pnand %p677_p10, %p671_p12 }
  0x5c   : > { %681 = shalt.err (!%p678_p13)
}
  0x5d   : > { %544 = dma.hbm_to_vmem [thread:$0]  (!%p927_p11), %s923_s14, 128, %s925_s15, %s232_s17  }
  0x5e   : > { %p1052_p5 = scmp.ne.s32.totalorder %s1047_s29, 0 }
  0x5f   : > { %s959_s18 = sand.u32 (!%p1052_p5), 1, %s744_s22   ;;  %p1053_p0 = scmp.ne.s32.totalorder (!%p1052_p5), %s1045_s27, 0 }
  0x60   : > { %251 = sbr.rel (%p1052_p5) target bundleno = 655 (0x28f), region = 44  ;;  %s501_s26 = sshll.u32 (!%p1052_p5), %s959_s18, 3 }
  0x61   : > { %s254_s11 = scalar_lea.sflag (!%p1052_p5), [#allocation3], %s959_s18  ;;  %s257_s9 = scalar_lea.vmem (!%p1052_p5), [#allocation2], %s501_s26 }
  0x67   : > { %727 = dma.done.wait (%p1053_p0), %s254_s11, 128  }
  0x68   : > { %729 = vsyncadd (%p1053_p0), %s254_s11, 4294967168  ;;  %p1054_p11 = scmp.eq.s32.totalorder %s818_s25, 0 }
  0x6a   : > { %731 = dma.done.wait (%p1054_p11), [#allocation6], 256   ;;  %p1055_p9 = pmov %p1054_p11 }
  0x6b   : > { %v759_v0 = vmov 0.0   ;;  %vm760_vm0 = vmmov 0   ;;  %v593_v1 = vld [vmem:[#allocation7] sm:$0xff]   ;;  %v295_v2 = vld [vmem:[%s257_s9] sm:$0xff]  ;;  %vm312_vm1 = vcmask 130048   ;;  %vm358_vm2 = vcmask 261120  }
  0x6c   : > { %733 = vsyncadd (%p1055_p9), [#allocation6], 4294967040  ;;  %516 = vmatprep.subr.bf16.mxu0 %v759_v0  ;;  %518 = vmatprep.mubr.msk.bf16.mxu0 %vm760_vm0, %v759_v0  ;;  %v296_v3 = vpack.c.bf16 %v295_v2, %v295_v2  ;;  %v505_v4 = vld [vmem:[%s1038_s3] ss:$0 sm:$0xff]  ;;  %v387_v24 = vld [vmem:[#allocation5] sm:$0xff]  ;;  %s511_s12 = sshll.u32 %s818_s25, 7 }
  0x6d   : > { %517 = vmatpush3.bf16.msra.mxu0 %v593_v1  ;;  %v508_v20 = vld [vmem:[%s1039_s4] ss:$0 sm:$0xff]  ;;  %s293_s10 = scalar_lea.vmem [#allocation8], %s501_s26  ;;  %s990_s11 = scalar_lea.hbm %s1041_s6, %s511_s12 }
  0x6e   : > { %v509_v22 = vld [vmem:[%s1040_s5] ss:$0 sm:$0xff]  ;;  %s404_s13 = sshll.u32 %s293_s10, 4  ;;  %s391_s9 = scalar_lea.sflag [#allocation4], %s959_s18  ;;  %s992_s13 = int_to_ptr.vmem [resolvable:$true] %s404_s13 }
  0x6f   : > { %s682_s29 = scalar_lea.vmem %s992_s13, 128  ;;  %s761_s25 = smov [#allocation8]  }
  0x70   : > { %519 = vmatmul.mubr.msk.bf16.vlgmr.msra.gmra.mrb[0].mxu0 %vm312_vm1, %v296_v3  ;;  %p683_p2 = scmp.ne.s32.totalorder %s992_s13, %s682_s29  ;;  %s686_s26 = sshll.u32 %s761_s25, 4  ;;  %s687_s26 = int_to_ptr.vmem [resolvable:$false] %s686_s26 }
  0x71   : > { %s688_s14 = scalar_lea.vmem %s687_s26, 256  ;;  %p689_p8 = scmp.lt.s32.totalorder %s992_s13, %s687_s26 }
  0x72   : > { %p684_p1 = pnand %p683_p2, %p910_p4  ;;  %p690_p12 = scmp.lt.s32.totalorder %s688_s14, %s682_s29 }
  0x74   : > { %p685_p6 = pneg %p684_p1  ;;  %p691_p3 = por %p690_p12, %p689_p8 }
  0x76   : > { %p692_p7 = pnand %p691_p3, %p685_p6 }
 0x143   : > { %v350_v5 = vpop.f32.mrb[0].mxu0 }
 0x144   : > { %v351_v6 = vadd.f32 %v505_v4, %v350_v5  ;;  %v520_v7 = vpop.f32.mrb[1].mxu0 }
 0x145   : > { %v353_v8 = vpop.f32.mrb[2].mxu0 }
 0x146   : > { %v521_v9 = vpop.f32.mrb[3].mxu0  ;;  %v359_v10 = vsel %vm358_vm2, %v351_v6, 0.0 }
 0x147   : > { %360 = vadd.xlane.f32.xlu0 %v359_v10 }
 0x1d4   : > { %v361_v11 = vpop.xlane.xlu0 %360 }
 0x1d5   : > { %v363_v12 = vmul.f32 0.03125, %v361_v11 }
 0x1d7   : > { %v364_v13 = vsub.f32 %v351_v6, %v363_v12 }
 0x1d9   : > { %v365_v14 = vmul.f32 %v364_v13, %v364_v13 }
 0x1db   : > { %v366_v15 = vsel %vm358_vm2, %v365_v14, 0.0 }
 0x1dc   : > { %367 = vadd.xlane.f32.xlu0 %v366_v15 }
 0x269   : > { %v368_v16 = vpop.xlane.xlu0 %367 }
 0x26a   : > { %v369_v17 = vmul.f32 0.03125, %v368_v16 }
 0x26c   : > { %v370_v18 = vadd.f32 1e-05, %v369_v17 }
 0x26e   : > { %594 = vrsqrt.f32 %v370_v18 }
 0x278   : > { %v595_v19 = vpop.eup %594 }
 0x279   : > { %v372_v21 = vmul.f32 %v595_v19, %v364_v13 }
 0x27b   : > { %v379_v23 = vmul.f32 %v508_v20, %v372_v21 }
 0x27d   : > { %v386_v25 = vadd.f32 %v509_v22, %v379_v23 }
 0x27f   : > { %v388_v26 = vadd.f32 %v387_v24, %v386_v25 }
 0x281   : > { %389 = vst.msk [vmem:[%s293_s10] sm:$0xff] %vm358_vm2, %v388_v26 }
 0x282   : > { %695 = shalt.err (!%p692_p7)
}
 0x283   : > { %s696_s18 = scalar_lea.hbm %s990_s11, 128  ;;  %s700_s16 = scalar_lea.hbm %s1041_s6, 256 }
 0x284   : > { %p697_p10 = scmp.ne.s32.totalorder %s990_s11, %s696_s18  ;;  %p701_p0 = scmp.lt.u32.totalorder %s990_s11, %s1041_s6 }
 0x285   : > { %p702_p11 = scmp.lt.u32.totalorder %s700_s16, %s696_s18  ;;  %p704_p2 = scmp.lt.u32.totalorder %s696_s18, %s990_s11 }
 0x286   : > { %p698_p13 = pnand %p697_p10, %p910_p4 }
 0x287   : > { %p703_p9 = por %p702_p11, %p701_p0 }
 0x288   : > { %p699_p5 = pneg %p698_p13 }
 0x289   : > { %p705_p1 = por %p704_p2, %p703_p9 }
 0x28b   : > { %p706_p6 = pnand %p705_p1, %p699_p5 }
 0x28d   : > { %709 = shalt.err (!%p706_p6)
}
 0x28e   : > { %532 = dma.vmem_to_hbm [thread:$0]  (%p910_p4), %s992_s13, 128, %s990_s11, %s391_s9  }
 0x28f PF: > { %s416_s10 = sand.u32 1, %s740_s21   ;;  %p1056_p8 = scmp.ne.s32.totalorder %s1046_s28, 0 }
 0x290   : > { %p1057_p12 = scmp.ge.s32.totalorder %s752_s24, 2  ;;  %s417_s7 = scalar_lea.sflag [#allocation4], %s416_s10 }
 0x292   : > { %p546_p3 = pnand %p1057_p12, %p1056_p8 }
 0x294   : > { %735 = dma.done.wait (!%p546_p3), %s417_s7, 128  }
 0x295   : > { %737 = vsyncadd (!%p546_p3), %s417_s7, 4294967168  ;;  %p20_p7 = scmp.ge.s32.totalorder %s900_s19, 4   ;;  %s1058_s21 = smov %s744_s22 }
 0x296   : > { %s1059_s22 = smov %s748_s23  ;;  %s1060_s23 = smov %s916_s8 }
 0x297   : > { %s1061_s24 = smov %s900_s19  ;;  %22 = sbr.rel (!%p20_p7) target bundleno = 6 (0x6), region = 97 }
 0x29e   :  { %422 = vsyncpa [#allocation3], 1 }
 0x29f   :  { %424 = vsyncpa [#allocation3 + $0x1], 1 }
 0x2a0   :  { %425 = vsyncpa [#allocation6], 1 }
 0x2a1   :  { %426 = vsyncpa [#allocation4], 1 }
 0x2a2   :  { %428 = vsyncpa [#allocation4 + $0x1], 1 }

</bundles_post_ra>
